<compile_context>
chip_gen: v7x
topology: tpu7x:2x2x1
jax: 0.10.0
libtpu: 0.0.40
codegen_flags: <defaults>
</compile_context>

<pallas_src>
import functools

import jax
import jax.numpy as jnp
from jax.experimental import pallas as pl
from jax.experimental.pallas import tpu as pltpu

_VMEM_LIMIT_BYTES = 48 * 1024 * 1024  # <= v7x 64 MiB physical; plenty for tm=2048


def _round_up(x, m):
    return ((x + m - 1) // m) * m


@functools.lru_cache(maxsize=1)
def _elementwise_dtype():
    """bf16 elementwise chain on chips with a bf16 VPU (v6e/v7x), else f32."""
    try:
        kind = jax.devices()[0].device_kind.lower()
    except Exception:
        return jnp.float32
    if any(tag in kind for tag in ("v6", "v7", "7x")):
        return jnp.bfloat16
    return jnp.float32


def _forward(x, lat, w1a, w2, b2, w3, b3, w4, b4, w5t, b5, *, edt):
    """Per-tile MLP.  x: (tm, 6); lat: (1, nlatent) in `edt` or None.
    w1a: (7, nlatent) bf16 with the layer-1 bias folded in as the last row;
    w2..w4: (Cin, Cout) bf16; b2..b4: (1, Cout) in `edt`;
    w5t: (2, nlatent//4) f32; b5: (1, 2) f32.  Returns (tm, 2) f32."""
    f32, bf16 = jnp.float32, jnp.bfloat16
    tm = x.shape[0]

    # Layer 1: bias folded into the matmul via a constant-1 lane (K: 6 -> 7).
    x7 = jnp.concatenate([x.astype(f32), jnp.ones((tm, 1), f32)], axis=-1)
    h = jnp.dot(x7.astype(bf16), w1a, preferred_element_type=f32)
    h = jnp.maximum(h.astype(edt), 0.0)          # relu(conv1(x) + b1)
    if lat is not None:
        h = h + lat                              # x += latent.unsqueeze(2)

    def layer(h, w, b):                          # conv + bias + relu
        acc = jnp.dot(h.astype(bf16), w, preferred_element_type=f32)
        return jnp.maximum(acc.astype(edt) + b, 0.0)

    h = layer(h, w2, b2)                         # relu(conv2)
    h = layer(h, w3, b3)                         # relu(conv3)
    h = layer(h, w4, b4)                         # relu(conv4)

    # conv5: Cout=2 -> two VPU multiplies + XLU lane reductions (skip the MXU).
    hf = h.astype(f32)
    o0 = jnp.sum(hf * w5t[0:1, :], axis=-1, keepdims=True)
    o1 = jnp.sum(hf * w5t[1:2, :], axis=-1, keepdims=True)
    return jnp.concatenate([o0, o1], axis=-1) + b5


def _kernel_with_latent(x_ref, lat_ref, w1a_ref, w2_ref, b2_ref, w3_ref, b3_ref,
                        w4_ref, b4_ref, w5t_ref, b5_ref, o_ref, *, edt):
    lat = lat_ref[pl.program_id(1)]              # (1, nlatent), fully resident
    out = _forward(x_ref[0], lat, w1a_ref[...], w2_ref[...], b2_ref[...],
                   w3_ref[...], b3_ref[...], w4_ref[...], b4_ref[...],
                   w5t_ref[...], b5_ref[...], edt=edt)
    o_ref[0] = out.astype(o_ref.dtype)


def _kernel_no_latent(x_ref, w1a_ref, w2_ref, b2_ref, w3_ref, b3_ref,
                      w4_ref, b4_ref, w5t_ref, b5_ref, o_ref, *, edt):
    out = _forward(x_ref[0], None, w1a_ref[...], w2_ref[...], b2_ref[...],
                   w3_ref[...], b3_ref[...], w4_ref[...], b4_ref[...],
                   w5t_ref[...], b5_ref[...], edt=edt)
    o_ref[0] = out.astype(o_ref.dtype)


def init_params(key, nlatent=256, dtype=jnp.float32):
    """Deterministic parameter init. Weights stored channels-last: (Cin, Cout)."""
    dims = [6, nlatent, nlatent, nlatent // 2, nlatent // 4, 2]
    params = []
    for i in range(5):
        key, kw, kb = jax.random.split(key, 3)
        cin, cout = dims[i], dims[i + 1]
        bound = 1.0 / (cin ** 0.5)  # mimic PyTorch Conv1d default uniform bound
        w = jax.random.uniform(kw, (cin, cout), dtype, -bound, bound)
        b = jax.random.uniform(kb, (1, cout), dtype, -bound, bound)
        params += [w, b]
    return params


@functools.partial(jax.jit, static_argnames=("tile_m",))
def map6d_to_2d(x, latent, params, tile_m=2048):
    """x: (B, N, 6); latent: (B, nlatent) or None; returns (B, N, 2)."""
    B, N, Cin = x.shape
    assert Cin == 6
    w1, b1, w2, b2, w3, b3, w4, b4, w5, b5 = params
    nlatent = w1.shape[1]
    f32, bf16 = jnp.float32, jnp.bfloat16
    edt = _elementwise_dtype()

    # Weight prep: layer-1 bias folded in as the last row (K: 6 -> 7); bf16
    # MXU operands (f32 accumulation in-kernel); tiny last layer stays f32.
    w1a = jnp.concatenate([w1, b1.reshape(1, nlatent)], axis=0).astype(bf16)
    w2b, w3b, w4b = (w.astype(bf16) for w in (w2, w3, w4))
    b2e, b3e, b4e = (b.reshape(1, -1).astype(edt) for b in (b2, b3, b4))
    w5t = w5.astype(f32).T                       # (2, nlatent // 4)
    b5f = b5.reshape(1, 2).astype(f32)

    # Point-axis tiling.  Block stays <= N and a multiple of 8 on the sublane
    # axis (or equals N exactly when N is small); a non-divisible tail block
    # is masked by Pallas, so no wrapper-side pad/slice HBM passes.
    if N <= tile_m or N <= 8:
        tm = N
    else:
        tm = min(_round_up(tile_m, 8), (N // 8) * 8)
    grid = (pl.cdiv(N, tm), B)                   # tile axis first; both parallel

    x_spec = pl.BlockSpec((1, tm, 6), lambda i, b: (b, i, 0))
    out_spec = pl.BlockSpec((1, tm, 2), lambda i, b: (b, i, 0))

    def resident(a):
        # Full block + constant index -> DMA'd once, stays resident in VMEM.
        return pl.BlockSpec(a.shape, lambda i, b: (0,) * a.ndim)

    weight_args = (w1a, w2b, b2e, w3b, b3e, w4b, b4e, w5t, b5f)
    weight_specs = [resident(w) for w in weight_args]

    if latent is None:
        kernel = functools.partial(_kernel_no_latent, edt=edt)
        in_specs = [x_spec] + weight_specs
        args = (x,) + weight_args
    else:
        lat3 = latent.astype(edt).reshape(B, 1, nlatent)
        kernel = functools.partial(_kernel_with_latent, edt=edt)
        in_specs = [x_spec, resident(lat3)] + weight_specs
        args = (x, lat3) + weight_args

    return pl.pallas_call(
        kernel,
        out_shape=jax.ShapeDtypeStruct((B, N, 2), x.dtype),
        grid_spec=pltpu.PrefetchScalarGridSpec(
            num_scalar_prefetch=0,
            grid=grid,
            in_specs=in_specs,
            out_specs=out_spec),
        compiler_params=pltpu.CompilerParams(
            dimension_semantics=("parallel", "parallel"),
            vmem_limit_bytes=_VMEM_LIMIT_BYTES),
    )(*args)


# ----------------------------- references ----------------------------------


def _reference_f32(x, latent, params):
    """Pure-f32 JAX forward replicating the PyTorch module exactly."""
    w1, b1, w2, b2, w3, b3, w4, b4, w5, b5 = params
    h = jnp.maximum(x @ w1 + b1, 0.0)
    if latent is not None:
        h = h + latent[:, None, :]
    h = jnp.maximum(h @ w2 + b2, 0.0)
    h = jnp.maximum(h @ w3 + b3, 0.0)
    h = jnp.maximum(h @ w4 + b4, 0.0)
    return h @ w5 + b5


def _reference_kernel_numerics(x, latent, params):
    """Mirrors the kernel's numerics: bf16 MXU operands with f32 accumulation,
    layer-1 bias folded into the matmul, elementwise chain in the same dtype
    the kernel picks for this chip."""
    f32, bf16 = jnp.float32, jnp.bfloat16
    edt = _elementwise_dtype()
    w1, b1, w2, b2, w3, b3, w4, b4, w5, b5 = params
    B, N, _ = x.shape
    x7 = jnp.concatenate([x.astype(f32), jnp.ones((B, N, 1), f32)], axis=-1)
    w1a = jnp.concatenate([w1, b1.reshape(1, -1)], axis=0)
    h = jnp.matmul(x7.astype(bf16), w1a.astype(bf16), preferred_element_type=f32)
    h = jnp.maximum(h.astype(edt), 0.0)
    if latent is not None:
        h = h + latent[:, None, :].astype(edt)

    def layer(h, w, b):
        acc = jnp.matmul(h.astype(bf16), w.astype(bf16),
                         preferred_element_type=f32)
        return jnp.maximum(acc.astype(edt) + b.reshape(1, -1).astype(edt), 0.0)

    h = layer(h, w2, b2)
    h = layer(h, w3, b3)
    h = layer(h, w4, b4)
    return (jnp.matmul(h.astype(f32), w5.astype(f32), preferred_element_type=f32)
            + b5.reshape(1, -1).astype(f32))


if __name__ == "__main__":
    key = jax.random.PRNGKey(0)
    nlatent = 32            # small hidden size for the smoke test
    B, N = 2, 16            # batch=2, 16 points of 6-D input each

    kx, kl, kp, kx2, kl2 = jax.random.split(key, 5)
    x = jax.random.normal(kx, (B, N, 6), jnp.float32)
    latent = jax.random.normal(kl, (B, nlatent), jnp.float32)
    params = init_params(kp, nlatent=nlatent)

    def _check(out, xv, latv):
        mir = _reference_kernel_numerics(xv, latv, params)
        ref = _reference_f32(xv, latv, params)
        assert out.shape == ref.shape, (out.shape, ref.shape)
        err_m = float(jnp.max(jnp.abs(out - mir)))
        err_f = float(jnp.max(jnp.abs(out - ref)))
        assert jnp.allclose(out, mir, atol=1e-2, rtol=1e-2), (
            f"mismatch vs kernel-numerics reference, max abs err = {err_m}")
        assert jnp.allclose(out, ref, atol=5e-2, rtol=5e-2), (
            f"mismatch vs f32 reference, max abs err = {err_f}")

    # Latent path.
    out = jax.block_until_ready(map6d_to_2d(x, latent, params))
    _check(out, x, latent)

    # latent=None path (PyTorch default) — specialized kernel without latent.
    out_nl = jax.block_until_ready(map6d_to_2d(x, None, params))
    _check(out_nl, x, None)

    # Non-divisible N: partial tail block handled in-kernel (no wrapper
    # pad of x or slice of out).
    x2 = jax.random.normal(kx2, (B, 24, 6), jnp.float32)
    lat2 = jax.random.normal(kl2, (B, nlatent), jnp.float32)
    out2 = jax.block_until_ready(map6d_to_2d(x2, lat2, params, tile_m=16))
    _check(out2, x2, lat2)

    print("KERNEL_OK")
</pallas_src>

<mosaic_0001>
module attributes {stable_mosaic.version = 11 : i64} {
  func.func @_kernel_with_latent(%arg0: i32, %arg1: i32, %arg2: memref<1x16x6xf32, #tpu.memory_space<vmem>>, %arg3: memref<2x1x32xf32, #tpu.memory_space<vmem>>, %arg4: memref<7x32xbf16, #tpu.memory_space<vmem>>, %arg5: memref<32x32xbf16, #tpu.memory_space<vmem>>, %arg6: memref<1x32xf32, #tpu.memory_space<vmem>>, %arg7: memref<32x16xbf16, #tpu.memory_space<vmem>>, %arg8: memref<1x16xf32, #tpu.memory_space<vmem>>, %arg9: memref<16x8xbf16, #tpu.memory_space<vmem>>, %arg10: memref<1x8xf32, #tpu.memory_space<vmem>>, %arg11: memref<2x8xf32, #tpu.memory_space<vmem>>, %arg12: memref<1x2xf32, #tpu.memory_space<vmem>>, %arg13: memref<1x16x2xf32, #tpu.memory_space<vmem>>) attributes {dimension_semantics = [#tpu.dimension_semantics<parallel>, #tpu.dimension_semantics<parallel>], iteration_bounds = array<i64: 1, 2>, scalar_prefetch = 0 : i64, scratch_operands = 0 : i64, tpu.core_type = #tpu.core_type<tc>, window_params = [{transform_indices = @transform_0, window_bounds = array<i64: 1, 16, 6>}, {pipeline_mode = #tpu.pipeline_mode<synchronous>, transform_indices = @transform_1, window_bounds = array<i64: 2, 1, 32>}, {pipeline_mode = #tpu.pipeline_mode<synchronous>, transform_indices = @transform_2, window_bounds = array<i64: 7, 32>}, {pipeline_mode = #tpu.pipeline_mode<synchronous>, transform_indices = @transform_3, window_bounds = array<i64: 32, 32>}, {pipeline_mode = #tpu.pipeline_mode<synchronous>, transform_indices = @transform_4, window_bounds = array<i64: 1, 32>}, {pipeline_mode = #tpu.pipeline_mode<synchronous>, transform_indices = @transform_5, window_bounds = array<i64: 32, 16>}, {pipeline_mode = #tpu.pipeline_mode<synchronous>, transform_indices = @transform_6, window_bounds = array<i64: 1, 16>}, {pipeline_mode = #tpu.pipeline_mode<synchronous>, transform_indices = @transform_7, window_bounds = array<i64: 16, 8>}, {pipeline_mode = #tpu.pipeline_mode<synchronous>, transform_indices = @transform_8, window_bounds = array<i64: 1, 8>}, {pipeline_mode = #tpu.pipeline_mode<synchronous>, transform_indices = @transform_9, window_bounds = array<i64: 2, 8>}, {pipeline_mode = #tpu.pipeline_mode<synchronous>, transform_indices = @transform_10, window_bounds = array<i64: 1, 2>}, {transform_indices = @transform_11, window_bounds = array<i64: 1, 16, 2>}]} {
    %0 = arith.index_cast %arg1 : i32 to index
    %c0 = arith.constant 0 : index
    %c0_0 = arith.constant 0 : index
    %1 = vector.load %arg3[%0, %c0, %c0_0] : memref<2x1x32xf32, #tpu.memory_space<vmem>>, vector<1x1x32xf32>
    %2 = vector.shape_cast %1 : vector<1x1x32xf32> to vector<1x32xf32>
    %c0_1 = arith.constant 0 : index
    %c0_2 = arith.constant 0 : index
    %c0_3 = arith.constant 0 : index
    %3 = vector.load %arg2[%c0_1, %c0_2, %c0_3] : memref<1x16x6xf32, #tpu.memory_space<vmem>>, vector<1x16x6xf32>
    %4 = vector.shape_cast %3 : vector<1x16x6xf32> to vector<16x6xf32>
    %c0_4 = arith.constant 0 : index
    %c0_5 = arith.constant 0 : index
    %5 = vector.load %arg4[%c0_4, %c0_5] : memref<7x32xbf16, #tpu.memory_space<vmem>>, vector<7x32xbf16>
    %c0_6 = arith.constant 0 : index
    %c0_7 = arith.constant 0 : index
    %6 = vector.load %arg5[%c0_6, %c0_7] : memref<32x32xbf16, #tpu.memory_space<vmem>>, vector<32x32xbf16>
    %c0_8 = arith.constant 0 : index
    %c0_9 = arith.constant 0 : index
    %7 = vector.load %arg6[%c0_8, %c0_9] : memref<1x32xf32, #tpu.memory_space<vmem>>, vector<1x32xf32>
    %c0_10 = arith.constant 0 : index
    %c0_11 = arith.constant 0 : index
    %8 = vector.load %arg7[%c0_10, %c0_11] : memref<32x16xbf16, #tpu.memory_space<vmem>>, vector<32x16xbf16>
    %c0_12 = arith.constant 0 : index
    %c0_13 = arith.constant 0 : index
    %9 = vector.load %arg8[%c0_12, %c0_13] : memref<1x16xf32, #tpu.memory_space<vmem>>, vector<1x16xf32>
    %c0_14 = arith.constant 0 : index
    %c0_15 = arith.constant 0 : index
    %10 = vector.load %arg9[%c0_14, %c0_15] : memref<16x8xbf16, #tpu.memory_space<vmem>>, vector<16x8xbf16>
    %c0_16 = arith.constant 0 : index
    %c0_17 = arith.constant 0 : index
    %11 = vector.load %arg10[%c0_16, %c0_17] : memref<1x8xf32, #tpu.memory_space<vmem>>, vector<1x8xf32>
    %c0_18 = arith.constant 0 : index
    %c0_19 = arith.constant 0 : index
    %12 = vector.load %arg11[%c0_18, %c0_19] : memref<2x8xf32, #tpu.memory_space<vmem>>, vector<2x8xf32>
    %c0_20 = arith.constant 0 : index
    %c0_21 = arith.constant 0 : index
    %13 = vector.load %arg12[%c0_20, %c0_21] : memref<1x2xf32, #tpu.memory_space<vmem>>, vector<1x2xf32>
    %cst = arith.constant 1.000000e+00 : f32
    %14 = vector.broadcast %cst : f32 to vector<16x1xf32>
    %15 = tpu.concatenate %4, %14 in 1 : vector<16x6xf32>, vector<16x1xf32> -> vector<16x7xf32>
    %16 = arith.truncf %15 : vector<16x7xf32> to vector<16x7xbf16>
    %cst_22 = arith.constant dense<0.000000e+00> : vector<16x32xf32>
    %17 = tpu.matmul %16, %5, %cst_22 {dimension_numbers = #tpu.dot_dimension_numbers<[1], [0], [0], [1], [0, 0, 1, 1], [], []>} : vector<16x7xbf16>, vector<7x32xbf16>, vector<16x32xf32> -> vector<16x32xf32>
    %cst_23 = arith.constant 0.000000e+00 : f32
    %18 = vector.broadcast %cst_23 : f32 to vector<16x32xf32>
    %19 = arith.maximumf %17, %18 : vector<16x32xf32>
    %20 = vector.broadcast %2 : vector<1x32xf32> to vector<16x32xf32>
    %21 = arith.addf %19, %20 : vector<16x32xf32>
    %22 = arith.truncf %21 : vector<16x32xf32> to vector<16x32xbf16>
    %cst_24 = arith.constant dense<0.000000e+00> : vector<16x32xf32>
    %23 = tpu.matmul %22, %6, %cst_24 {dimension_numbers = #tpu.dot_dimension_numbers<[1], [0], [0], [1], [0, 0, 1, 1], [], []>} : vector<16x32xbf16>, vector<32x32xbf16>, vector<16x32xf32> -> vector<16x32xf32>
    %24 = vector.broadcast %7 : vector<1x32xf32> to vector<16x32xf32>
    %25 = arith.addf %23, %24 : vector<16x32xf32>
    %cst_25 = arith.constant 0.000000e+00 : f32
    %26 = vector.broadcast %cst_25 : f32 to vector<16x32xf32>
    %27 = arith.maximumf %25, %26 : vector<16x32xf32>
    %28 = arith.truncf %27 : vector<16x32xf32> to vector<16x32xbf16>
    %cst_26 = arith.constant dense<0.000000e+00> : vector<16x16xf32>
    %29 = tpu.matmul %28, %8, %cst_26 {dimension_numbers = #tpu.dot_dimension_numbers<[1], [0], [0], [1], [0, 0, 1, 1], [], []>} : vector<16x32xbf16>, vector<32x16xbf16>, vector<16x16xf32> -> vector<16x16xf32>
    %30 = vector.broadcast %9 : vector<1x16xf32> to vector<16x16xf32>
    %31 = arith.addf %29, %30 : vector<16x16xf32>
    %cst_27 = arith.constant 0.000000e+00 : f32
    %32 = vector.broadcast %cst_27 : f32 to vector<16x16xf32>
    %33 = arith.maximumf %31, %32 : vector<16x16xf32>
    %34 = arith.truncf %33 : vector<16x16xf32> to vector<16x16xbf16>
    %cst_28 = arith.constant dense<0.000000e+00> : vector<16x8xf32>
    %35 = tpu.matmul %34, %10, %cst_28 {dimension_numbers = #tpu.dot_dimension_numbers<[1], [0], [0], [1], [0, 0, 1, 1], [], []>} : vector<16x16xbf16>, vector<16x8xbf16>, vector<16x8xf32> -> vector<16x8xf32>
    %36 = vector.broadcast %11 : vector<1x8xf32> to vector<16x8xf32>
    %37 = arith.addf %35, %36 : vector<16x8xf32>
    %cst_29 = arith.constant 0.000000e+00 : f32
    %38 = vector.broadcast %cst_29 : f32 to vector<16x8xf32>
    %39 = arith.maximumf %37, %38 : vector<16x8xf32>
    %40 = vector.extract_strided_slice %12 {offsets = [0, 0], sizes = [1, 8], strides = [1, 1]} : vector<2x8xf32> to vector<1x8xf32>
    %41 = vector.broadcast %40 : vector<1x8xf32> to vector<16x8xf32>
    %42 = arith.mulf %39, %41 : vector<16x8xf32>
    %cst_30 = arith.constant dense<0.000000e+00> : vector<16xf32>
    %43 = vector.multi_reduction <add>, %42, %cst_30 [1] : vector<16x8xf32> to vector<16xf32>
    %44 = vector.shape_cast %43 : vector<16xf32> to vector<16x1xf32>
    %45 = vector.extract_strided_slice %12 {offsets = [1, 0], sizes = [1, 8], strides = [1, 1]} : vector<2x8xf32> to vector<1x8xf32>
    %46 = vector.broadcast %45 : vector<1x8xf32> to vector<16x8xf32>
    %47 = arith.mulf %39, %46 : vector<16x8xf32>
    %cst_31 = arith.constant dense<0.000000e+00> : vector<16xf32>
    %48 = vector.multi_reduction <add>, %47, %cst_31 [1] : vector<16x8xf32> to vector<16xf32>
    %49 = vector.shape_cast %48 : vector<16xf32> to vector<16x1xf32>
    %50 = tpu.concatenate %44, %49 in 1 : vector<16x1xf32>, vector<16x1xf32> -> vector<16x2xf32>
    %51 = vector.broadcast %13 : vector<1x2xf32> to vector<16x2xf32>
    %52 = arith.addf %50, %51 : vector<16x2xf32>
    %c0_32 = arith.constant 0 : index
    %c0_33 = arith.constant 0 : index
    %c0_34 = arith.constant 0 : index
    %53 = vector.load %arg13[%c0_32, %c0_33, %c0_34] : memref<1x16x2xf32, #tpu.memory_space<vmem>>, vector<1x16x2xf32>
    %54 = vector.shape_cast %53 : vector<1x16x2xf32> to vector<16x2xf32>
    %55 = vector.shape_cast %52 : vector<16x2xf32> to vector<1x16x2xf32>
    tpu.vector_store %arg13[%c0_32, %c0_33, %c0_34], %55 {strides = array<i32>} : memref<1x16x2xf32, #tpu.memory_space<vmem>>, vector<1x16x2xf32>,
    return
  }
  func.func @transform_0(%arg0: i32, %arg1: i32) -> (i32, i32, i32) {
    %c0_i32 = arith.constant 0 : i32
    %c0_i32_0 = arith.constant 0 : i32
    return %arg1, %arg0, %c0_i32 : i32, i32, i32
  }
  func.func @transform_1(%arg0: i32, %arg1: i32) -> (i32, i32, i32) {
    %c0_i32 = arith.constant 0 : i32
    %c0_i32_0 = arith.constant 0 : i32
    %c0_i32_1 = arith.constant 0 : i32
    %c0_i32_2 = arith.constant 0 : i32
    return %c0_i32, %c0_i32_0, %c0_i32_1 : i32, i32, i32
  }
  func.func @transform_2(%arg0: i32, %arg1: i32) -> (i32, i32) {
    %c0_i32 = arith.constant 0 : i32
    %c0_i32_0 = arith.constant 0 : i32
    %c0_i32_1 = arith.constant 0 : i32
    return %c0_i32, %c0_i32_0 : i32, i32
  }
  func.func @transform_3(%arg0: i32, %arg1: i32) -> (i32, i32) {
    %c0_i32 = arith.constant 0 : i32
    %c0_i32_0 = arith.constant 0 : i32
    %c0_i32_1 = arith.constant 0 : i32
    return %c0_i32, %c0_i32_0 : i32, i32
  }
  func.func @transform_4(%arg0: i32, %arg1: i32) -> (i32, i32) {
    %c0_i32 = arith.constant 0 : i32
    %c0_i32_0 = arith.constant 0 : i32
    %c0_i32_1 = arith.constant 0 : i32
    return %c0_i32, %c0_i32_0 : i32, i32
  }
  func.func @transform_5(%arg0: i32, %arg1: i32) -> (i32, i32) {
    %c0_i32 = arith.constant 0 : i32
    %c0_i32_0 = arith.constant 0 : i32
    %c0_i32_1 = arith.constant 0 : i32
    return %c0_i32, %c0_i32_0 : i32, i32
  }
  func.func @transform_6(%arg0: i32, %arg1: i32) -> (i32, i32) {
    %c0_i32 = arith.constant 0 : i32
    %c0_i32_0 = arith.constant 0 : i32
    %c0_i32_1 = arith.constant 0 : i32
    return %c0_i32, %c0_i32_0 : i32, i32
  }
  func.func @transform_7(%arg0: i32, %arg1: i32) -> (i32, i32) {
    %c0_i32 = arith.constant 0 : i32
    %c0_i32_0 = arith.constant 0 : i32
    %c0_i32_1 = arith.constant 0 : i32
    return %c0_i32, %c0_i32_0 : i32, i32
  }
  func.func @transform_8(%arg0: i32, %arg1: i32) -> (i32, i32) {
    %c0_i32 = arith.constant 0 : i32
    %c0_i32_0 = arith.constant 0 : i32
    %c0_i32_1 = arith.constant 0 : i32
    return %c0_i32, %c0_i32_0 : i32, i32
  }
  func.func @transform_9(%arg0: i32, %arg1: i32) -> (i32, i32) {
    %c0_i32 = arith.constant 0 : i32
    %c0_i32_0 = arith.constant 0 : i32
    %c0_i32_1 = arith.constant 0 : i32
    return %c0_i32, %c0_i32_0 : i32, i32
  }
  func.func @transform_10(%arg0: i32, %arg1: i32) -> (i32, i32) {
    %c0_i32 = arith.constant 0 : i32
    %c0_i32_0 = arith.constant 0 : i32
    %c0_i32_1 = arith.constant 0 : i32
    return %c0_i32, %c0_i32_0 : i32, i32
  }
  func.func @transform_11(%arg0: i32, %arg1: i32) -> (i32, i32, i32) {
    %c0_i32 = arith.constant 0 : i32
    %c0_i32_0 = arith.constant 0 : i32
    return %arg1, %arg0, %c0_i32 : i32, i32, i32
  }
}

</mosaic_0001>

<bundles_post_ra>
// kernel: map6d_to_2d.1
= control target key start
LH: loop header
LB: loop body
LE: loop exit
PB: predicated region body
PF: predicated region fallthrough
CT: control target
= control target key end

     0   :  { %s1015_s17 = smov 0   ;;  %s1017_s18 = smov 0   ;;  %s1102_s0 = inlined_call_operand.vmem [shape: f32[2,16,6], index: 0, kind: input, shape index: {}]   ;;  %s1103_s1 = inlined_call_operand.vmem [shape: f32[2,1,32], index: 1, kind: input, shape index: {}]   ;;  %s1104_s2 = inlined_call_operand.vmem [shape: bf16[7,32], index: 2, kind: input, shape index: {}]   ;;  %s1105_s3 = inlined_call_operand.vmem [shape: bf16[32,32], index: 3, kind: input, shape index: {}]   ;;  %s1106_s4 = inlined_call_operand.vmem [shape: f32[1,32], index: 4, kind: input, shape index: {}]   ;;  %s1107_s5 = inlined_call_operand.vmem [shape: bf16[32,16], index: 5, kind: input, shape index: {}]   ;;  %s1108_s6 = inlined_call_operand.vmem [shape: f32[1,16], index: 6, kind: input, shape index: {}]   ;;  %s1109_s7 = inlined_call_operand.vmem [shape: bf16[16,8], index: 7, kind: input, shape index: {}]   ;;  %s1110_s8 = inlined_call_operand.vmem [shape: f32[1,8], index: 8, kind: input, shape index: {}]   ;;  %s1111_s9 = inlined_call_operand.vmem [shape: f32[2,8], index: 9, kind: input, shape index: {}]   ;;  %s1112_s10 = inlined_call_operand.vmem [shape: f32[1,2], index: 10, kind: input, shape index: {}]   ;;  %s1113_s11 = inlined_call_operand.vmem [shape: f32[2,16,2], index: 11, kind: output, shape index: {}]  }
   0x1   :  { %s1019_s19 = smov 0  }
   0x2 LB: > { %s30_s20 = sadd.s32 1, %s946_s18  ;;  %p835_p0 = scmp.ge.s32.totalorder %s950_s19, 1  ;;  %s950_s19 = sphi %s1019_s19, %s21_s19   ;;  %s946_s18 = sphi %s1017_s18, %s1115_s18   ;;  %s942_s17 = sphi %s1015_s17, %s1114_s17  }
   0x3   : > { %p31_p1 = scmp.ge.s32.totalorder %s30_s20, 2  ;;  %p358_p2 = scmp.lt.s32.totalorder %s950_s19, 3 }
   0x5   : > { %s1117_s20 = smov (%p31_p1, %s30_s20), 0  ;;  %p359_p3 = pnand %p835_p0, %p358_p2 }
   0x6   : > { %v431_v0 = vld [vmem:[%s1104_s2] sm:$0xf] (!%p359_p3)  ;;  %vm455_vm0 = vcmask (!%p359_p3), 1042432   ;;  %vm456_vm1 = vcmask (!%p359_p3), 1043456   ;;  %v952_v1 = vmov (!%p359_p3), 0.0   ;;  %v953_v2 = vmov (!%p359_p3), 65535   ;;  %s427_s15 = scalar_lea.vmem (!%p359_p3), %s1103_s1, %s942_s17 }
   0x7   : > { %362 = sbr.rel (%p359_p3) target bundleno = 1051 (0x41b), region = 64  ;;  %868 = vmatprep.subr.bf16.mxu0 (!%p359_p3), %v952_v1  ;;  %v457_v3 = vsel (!%p359_p3), %vm455_vm0, 4294967295, %v953_v2  ;;  %p407_p4 = scmp.lt.s32.totalorder (!%p359_p3), %s942_s17, 1  ;;  %874 = vmatprep.subr.bf16.mxu1 (!%p359_p3), %v952_v1  ;;  %vm954_vm2 = vmmov (!%p359_p3), 0   ;;  %vm447_vm3 = vcmask (!%p359_p3), 48128   ;;  %vm451_vm4 = vcmask (!%p359_p3), 56320  }
   0x8   : > { %v458_v4 = vsel (!%p359_p3), %vm456_vm1, %v457_v3, 0  ;;  %870 = vmatprep.mubr.msk.bf16.mxu0 (!%p359_p3), %vm954_vm2, %v952_v1  ;;  %878 = vmatprep.mubr.msk.bf16.mxu1 (!%p359_p3), %vm954_vm2, %v952_v1  ;;  %v923_v11 = vld [vmem:[%s1105_s3] sm:$0xff] (!%p359_p3)   ;;  %v924_v12 = vld [vmem:[%s1105_s3 + $0x8] sm:$0xff] (!%p359_p3)   ;;  %vm532_vm5 = vcmask (!%p359_p3), 261120   ;;  %vm657_vm6 = vcmask (!%p359_p3), 130048   ;;  %v704_v46 = vlaneseq (!%p359_p3) }
   0x9   : > { %v460_v5 = vand.u32 (!%p359_p3), %v458_v4, %v431_v0  ;;  %875 = vmatpush3.bf16.msra.mxu1 (!%p359_p3), %v923_v11  ;;  %v841_v16 = vld [vmem:[%s427_s15] ss:$0 sm:$0xff] (!%p359_p3)  ;;  %v926_v24 = vld [vmem:[%s1107_s5 + $0x8] sm:$0xff] (!%p359_p3)   ;;  %vm710_vm7 = vcmask (!%p359_p3), 64512   ;;  %vm729_vm8 = vcmask (!%p359_p3), 7168   ;;  %vm740_vm9 = vcmask (!%p359_p3), 15360  }
   0xa   : > { %876 = vmatprep.subr.bf16.mxu1 (!%p359_p3), %v952_v1  ;;  %v925_v23 = vld [vmem:[%s1107_s5] sm:$0xff] (!%p359_p3)   ;;  %v705_v47 = vshrl.u32 (!%p359_p3), %v704_v46, 7 }
   0xb   : > { %869 = vmatpush3.bf16.msra.mxu0 (!%p359_p3), %v460_v5  ;;  %v842_v25 = vld [vmem:[%s1106_s4] ss:$0 sm:$0xff] (!%p359_p3) }
   0xc   : > { %882 = vmatprep.subr.bf16.mxu0 (!%p359_p3), %v952_v1  ;;  %v927_v35 = vld [vmem:[%s1109_s7] sm:$0xff] (!%p359_p3)   ;;  %v719_v48 = vsub.s32 (!%p359_p3), 1, %v705_v47  ;;  %v706_v49 = vsub.s32 (!%p359_p3), 0, %v705_v47 }
   0xd   : > { %877 = vmatpush3.bf16.msra.mxu1 (!%p359_p3), %v924_v12  ;;  %v846_v36 = vld [vmem:[%s1108_s6] ss:$0 sm:$0xff] (!%p359_p3) }
   0xe   : > { %s1042_s23 = scalar_select %p407_p4, %s942_s17, 1  ;;  %890 = vmatprep.subr.bf16.mxu1 %v952_v1  ;;  %v850_v50 = vld [vmem:[%s1110_s8] ss:$0 sm:$0xff] }
   0xf   : > { %v445_v51 = vld [vmem:[%s1111_s9] sm:$0x3] }
  0x10   : > { %s856_s24 = sshll.u32 %s1042_s23, 4  ;;  %v720_v55 = vrot.slane %v445_v51, %v719_v48  ;;  %v707_v56 = vrot.slane %v445_v51, %v706_v49 }
  0x11   : > { %s414_s27 = scalar_lea.vmem %s1102_s0, %s856_s24  ;;  %s424_s25 = scalar_lea.vmem %s1113_s11, %s856_s24 }
  0x12   : > { %v429_v6 = vld [vmem:[%s414_s27] sm:$0xff]  ;;  %v430_v7 = vld [vmem:[%s414_s27 + $0x8] sm:$0xff] }
  0x13   : > { %v448_v8 = vsel %vm447_vm3, %v429_v6, 1.0  ;;  %v449_v9 = vsel %vm447_vm3, %v430_v7, 1.0  ;;  %v853_v6 = vld [vmem:[%s1112_s10] ss:$0 sm:$0xff] }
  0x14   : > { %v450_v10 = vpack.c.bf16 %v449_v9, %v448_v8 }
  0x16   : > { %871 = vmatmul.mubr.msk.bf16.vlgmr.msra.gmra.mrb[0].mxu0 %vm451_vm4, %v450_v10 }
  0x17   : > { %886 = vmatprep.mubr.msk.bf16.mxu0 %vm954_vm2, %v952_v1  ;;  %883 = vmatpush3.bf16.msra.mxu0 %v925_v23 }
  0x18   : > { %884 = vmatprep.subr.bf16.mxu0 %v952_v1 }
  0x1b   : > { %885 = vmatpush3.bf16.msra.mxu0 %v926_v24 }
  0xe9   : > { %v496_v13 = vpop.f32.mrb[0].mxu0 }
  0xea   : > { %v503_v14 = vmax.f32 %v496_v13, 0.0  ;;  %v872_v15 = vpop.f32.mrb[1].mxu0 }
  0xeb   : > { %v499_v17 = vpop.f32.mrb[2].mxu0 }
  0xec   : > { %v504_v18 = vmax.f32 %v499_v17, 0.0  ;;  %v873_v19 = vpop.f32.mrb[3].mxu0  ;;  %v511_v20 = vadd.f32 %v841_v16, %v503_v14 }
  0xee   : > { %v512_v21 = vadd.f32 %v841_v16, %v504_v18 }
  0xf0   : > { %v513_v22 = vpack.c.bf16 %v512_v21, %v511_v20 }
  0xf2   : > { %879 = vmatmul.mubr.msk.bf16.vlgmr.msra.gmra.mrb[0].mxu1 %vm532_vm5, %v513_v22 }
  0xf3   : > { %892 = vmatprep.mubr.msk.bf16.mxu1 %vm954_vm2, %v952_v1  ;;  %891 = vmatpush3.bf16.msra.mxu1 %v927_v35 }
 0x1c5   : > { %v570_v26 = vpop.f32.mrb[0].mxu1 }
 0x1c6   : > { %v571_v27 = vadd.f32 %v842_v25, %v570_v26  ;;  %v880_v28 = vpop.f32.mrb[1].mxu1 }
 0x1c7   : > { %v573_v29 = vpop.f32.mrb[2].mxu1 }
 0x1c8   : > { %v574_v30 = vadd.f32 %v842_v25, %v573_v29  ;;  %v881_v31 = vpop.f32.mrb[3].mxu1  ;;  %v577_v32 = vmax.f32 %v571_v27, 0.0 }
 0x1ca   : > { %v578_v33 = vmax.f32 %v574_v30, 0.0 }
 0x1cc   : > { %v579_v34 = vpack.c.bf16 %v578_v33, %v577_v32 }
 0x1ce   : > { %887 = vmatmul.mubr.msk.bf16.vlgmr.msra.gmra.mrb[4].mxu0 %vm532_vm5, %v579_v34 }
 0x2a1   : > { %v635_v37 = vpop.f32.mrb[4].mxu0 }
 0x2a2   : > { %v636_v38 = vadd.f32 %v846_v36, %v635_v37  ;;  %v888_v39 = vpop.f32.mrb[5].mxu0 }
 0x2a3   : > { %v638_v40 = vpop.f32.mrb[6].mxu0 }
 0x2a4   : > { %v639_v41 = vadd.f32 %v846_v36, %v638_v40  ;;  %v889_v42 = vpop.f32.mrb[7].mxu0  ;;  %v642_v43 = vmax.f32 %v636_v38, 0.0 }
 0x2a6   : > { %v643_v44 = vmax.f32 %v639_v41, 0.0 }
 0x2a8   : > { %v644_v45 = vpack.c.bf16 %v643_v44, %v642_v43 }
 0x2aa   : > { %893 = vmatmul.mubr.msk.bf16.vlgmr.msra.gmra.mrb[4].mxu1 %vm657_vm6, %v644_v45 }
 0x37d   : > { %v695_v52 = vpop.f32.mrb[4].mxu1 }
 0x37e   : > { %v696_v53 = vadd.f32 %v850_v50, %v695_v52  ;;  %v894_v54 = vpop.f32.mrb[5].mxu1 }
 0x37f   : > { %v698_v57 = vpop.f32.mrb[6].mxu1 }
 0x380   : > { %v702_v58 = vmax.f32 %v696_v53, 0.0  ;;  %v699_v59 = vadd.f32 %v850_v50, %v698_v57  ;;  %v895_v60 = vpop.f32.mrb[7].mxu1 }
 0x382   : > { %v703_v61 = vmax.f32 %v699_v59, 0.0  ;;  %v721_v62 = vmul.f32 %v720_v55, %v702_v58  ;;  %v708_v63 = vmul.f32 %v707_v56, %v702_v58 }
 0x384   : > { %v723_v0 = vsel %vm710_vm7, %v721_v62, 0.0  ;;  %v711_v1 = vsel %vm710_vm7, %v708_v63, 0.0  ;;  %v722_v2 = vmul.f32 %v720_v55, %v703_v61  ;;  %v709_v3 = vmul.f32 %v707_v56, %v703_v61 }
 0x385   : > { %724 = vadd.xlane.f32.xlu1 %v723_v0  ;;  %712 = vadd.xlane.f32.xlu0 %v711_v1 }
 0x386   : > { %v726_v4 = vsel %vm710_vm7, %v722_v2, 0.0  ;;  %v714_v5 = vsel %vm710_vm7, %v709_v3, 0.0 }
 0x389   : > { %727 = vadd.xlane.f32.xlu1 %v726_v4  ;;  %715 = vadd.xlane.f32.xlu0 %v714_v5 }
 0x412   : > { %v725_v7 = vpop.xlane.xlu1 %724  ;;  %v713_v8 = vpop.xlane.xlu0 %712 }
 0x413   : > { %v730_v9 = vsel %vm729_vm8, %v713_v8, %v725_v7 }
 0x414   : > { %v738_v10 = vadd.f32 %v853_v6, %v730_v9 }
 0x416   : > { %741 = vst.msk [vmem:[%s424_s25] sm:$0xff] %vm740_vm9, %v738_v10  ;;  %v728_v11 = vpop.xlane.xlu1 %727  ;;  %v716_v12 = vpop.xlane.xlu0 %715 }
 0x417   : > { %v731_v13 = vsel %vm729_vm8, %v716_v12, %v728_v11 }
 0x418   : > { %v739_v14 = vadd.f32 %v853_v6, %v731_v13 }
 0x41a   : > { %742 = vst.msk [vmem:[%s424_s25 + $0x8] sm:$0xff] %vm740_vm9, %v739_v14 }
 0x41b PF: > { %s21_s19 = sadd.s32 1, %s950_s19   ;;  %s1114_s17 = smov %s946_s18 }
 0x41c   : > { %p18_p5 = scmp.ge.s32.totalorder %s21_s19, 4   ;;  %s1115_s18 = smov %s1117_s20 }
 0x41e   :  { %20 = sbr.rel (!%p18_p5) target bundleno = 2 (0x2), region = 95 }

</bundles_post_ra>
